<compile_context>
chip_gen: v7x
topology: tpu7x:2x2x1
jax: 0.10.0
libtpu: 0.0.40
codegen_flags: <defaults>
</compile_context>

<pallas_src>
from functools import partial

import jax
import jax.numpy as jnp
from jax import lax
from jax.experimental import pallas as pl
from jax.experimental.pallas import tpu as pltpu


def _qkv_proj_kernel(x_ref, wq_ref, wk_ref, wv_ref, q_ref, k_ref, v_ref):
    """q/k/v tiles = x tile @ w_{q,k,v}  (bf16 MXU operands, f32 accumulation)."""
    x = x_ref[0]                                                      # (tn, C)
    q_ref[0] = jnp.dot(x, wq_ref[...],
                       preferred_element_type=jnp.float32).astype(q_ref.dtype)
    k_ref[0] = jnp.dot(x, wk_ref[...],
                       preferred_element_type=jnp.float32).astype(k_ref.dtype)
    v_ref[0] = jnp.dot(x, wv_ref[...],
                       preferred_element_type=jnp.float32).astype(v_ref.dtype)


def _attn_proj_kernel(q_ref, k_ref, v_ref, wproj_ref, bproj_ref, o_ref, hbuf,
                      *, num_heads, head_dim):
    """One (batch, query-tile) step: per-head attention + fused output projection."""
    for h in range(num_heads):                    # static unroll over heads
        lo = h * head_dim
        hi = lo + head_dim
        q_h = q_ref[0, :, lo:hi]                  # (tq, hd) compute dtype, pre-scaled
        k_h = k_ref[0, :, lo:hi]                  # (N,  hd)
        v_h = v_ref[0, :, lo:hi]                  # (N,  hd)

        # Scores: contract head_dim on both operands (no explicit K transpose).
        s = lax.dot_general(q_h, k_h, (((1,), (1,)), ((), ())),
                            preferred_element_type=jnp.float32)       # (tq, N) f32

        # f32 softmax with deferred normalization (scale (tq,hd), not (tq,N)).
        m = jnp.max(s, axis=-1, keepdims=True)
        p = jnp.exp(s - m)                                            # (tq, N) f32
        denom = jnp.sum(p, axis=-1, keepdims=True)                    # (tq, 1)
        o_h = jnp.dot(p.astype(v_h.dtype), v_h,
                      preferred_element_type=jnp.float32)             # (tq, hd) f32
        o_h = o_h * pl.reciprocal(denom, approx=True)

        # Concatenate heads on the lane dim in VMEM scratch (static slice store).
        hbuf[:, lo:hi] = o_h.astype(hbuf.dtype)

    # Single full-depth (K = C) output projection + bias (f32 accumulation).
    y = jnp.dot(hbuf[...], wproj_ref[...], preferred_element_type=jnp.float32)
    y = y + bproj_ref[...]
    o_ref[0] = y.astype(o_ref.dtype)


def multi_head_self_attention(x, w_qkv, w_proj, b_proj, *, num_heads,
                              seq_tile=None, compute_dtype=jnp.bfloat16):
    """x: (B, N, C). Returns (B, N, C) in x.dtype."""
    B, N, C = x.shape
    assert C % num_heads == 0, "dim should be divisible by num_heads"
    head_dim = C // num_heads
    scale = head_dim ** (-0.5)

    if seq_tile is None:
        seq_tile = N if N <= 128 else 128     # 128 matches v5e MXU M; halves intermediates
    assert N % seq_tile == 0, "N must be divisible by seq_tile"
    assert seq_tile == N or seq_tile % 8 == 0
    tn = tq = seq_tile

    # Split w_qkv into per-projection weights; fold attention scale into w_q.
    w_qkv_f = w_qkv.astype(jnp.float32)
    w_q = (w_qkv_f[:, 0 * C:1 * C] * scale).astype(compute_dtype)
    w_k = w_qkv_f[:, 1 * C:2 * C].astype(compute_dtype)
    w_v = w_qkv_f[:, 2 * C:3 * C].astype(compute_dtype)
    x_c = x.astype(compute_dtype)
    w_proj_c = w_proj.astype(compute_dtype)
    b_proj_2d = b_proj.reshape(1, C).astype(jnp.float32)

    cbytes = jnp.dtype(compute_dtype).itemsize
    obytes = jnp.dtype(x.dtype).itemsize

    # Footprint-based VMEM limit (conservative: double-buffer everything),
    # capped by the device's actual VMEM capacity.
    fp1 = 2 * (tn * C + 3 * C * C + 3 * tn * C) * cbytes
    fp2 = (2 * (tq * C + 2 * N * C + C * C) * cbytes       # q tile, K, V, w_proj
           + 2 * C * 4                                      # bias
           + 2 * tq * C * obytes                            # output tile
           + tq * C * cbytes                                # head-concat scratch
           + 4 * tq * N * 4)                                # per-head f32 softmax temporaries
    try:
        vmem_cap = pltpu.get_tpu_info().vmem_capacity_bytes
    except Exception:
        vmem_cap = 64 * 1024 * 1024
    vmem_limit = int(min(max(2 * max(fp1, fp2), 32 * 1024 * 1024),
                         int(0.75 * vmem_cap)))

    # ---- kernel 1: fused QKV projection, three lane-dense (B, N, C) outputs ----
    q, k, v = pl.pallas_call(
        _qkv_proj_kernel,
        out_shape=(jax.ShapeDtypeStruct((B, N, C), compute_dtype),) * 3,
        grid_spec=pltpu.PrefetchScalarGridSpec(
            num_scalar_prefetch=0,
            grid=(B, N // tn),
            in_specs=[
                pl.BlockSpec((1, tn, C), lambda b, i: (b, i, 0)),     # x tile
                pl.BlockSpec((C, C), lambda b, i: (0, 0)),            # w_q (resident, scaled)
                pl.BlockSpec((C, C), lambda b, i: (0, 0)),            # w_k (resident)
                pl.BlockSpec((C, C), lambda b, i: (0, 0)),            # w_v (resident)
            ],
            out_specs=[pl.BlockSpec((1, tn, C), lambda b, i: (b, i, 0))] * 3,
        ),
        compiler_params=pltpu.CompilerParams(
            dimension_semantics=("parallel", "parallel"),
            vmem_limit_bytes=vmem_limit),
        cost_estimate=pl.CostEstimate(
            flops=2 * B * N * C * 3 * C,
            transcendentals=0,
            bytes_accessed=(B * N * C + 3 * C * C + 3 * B * N * C) * cbytes),
    )(x_c, w_q, w_k, w_v)

    # ---- kernel 2: per-head attention (deferred-normalized softmax) + projection ----
    attn_kernel = partial(_attn_proj_kernel, num_heads=num_heads, head_dim=head_dim)
    out = pl.pallas_call(
        attn_kernel,
        out_shape=jax.ShapeDtypeStruct((B, N, C), x.dtype),
        grid_spec=pltpu.PrefetchScalarGridSpec(
            num_scalar_prefetch=0,
            grid=(B, N // tq),
            in_specs=[
                pl.BlockSpec((1, tq, C), lambda b, i: (b, i, 0)),     # q tile (pre-scaled)
                pl.BlockSpec((1, N, C), lambda b, i: (b, 0, 0)),      # K (resident per b)
                pl.BlockSpec((1, N, C), lambda b, i: (b, 0, 0)),      # V (resident per b)
                pl.BlockSpec((C, C), lambda b, i: (0, 0)),            # w_proj (resident)
                pl.BlockSpec((1, C), lambda b, i: (0, 0)),            # b_proj
            ],
            out_specs=pl.BlockSpec((1, tq, C), lambda b, i: (b, i, 0)),   # lane-dense output
            scratch_shapes=[pltpu.VMEM((tq, C), compute_dtype)],          # head-concat buffer
        ),
        compiler_params=pltpu.CompilerParams(
            dimension_semantics=("parallel", "parallel"),
            vmem_limit_bytes=vmem_limit),
        cost_estimate=pl.CostEstimate(
            flops=4 * B * num_heads * N * N * head_dim + 2 * B * N * C * C,
            transcendentals=B * num_heads * N * N,
            bytes_accessed=(3 * B * N * C + C * C) * cbytes + C * 4 + B * N * C * obytes),
    )(q, k, v, w_proj_c, b_proj_2d)
    return out


def _reference(x, w_qkv, w_proj, b_proj, *, num_heads):
    """Pure-JAX f32 reference mirroring the PyTorch forward (non-fused path)."""
    B, N, C = x.shape
    hd = C // num_heads
    scale = hd ** (-0.5)
    qkv = (x @ w_qkv).reshape(B, N, 3, num_heads, hd).transpose(2, 0, 3, 1, 4)
    q, k, v = qkv[0], qkv[1], qkv[2]                    # (B, H, N, hd)
    attn = (q * scale) @ jnp.swapaxes(k, -2, -1)        # (B, H, N, N)
    attn = jax.nn.softmax(attn, axis=-1)
    y = attn @ v                                        # (B, H, N, hd)
    y = jnp.swapaxes(y, 1, 2).reshape(B, N, C)
    return y @ w_proj + b_proj


if __name__ == "__main__":
    def run_case(B, N, C, num_heads, seq_tile):
        key = jax.random.PRNGKey(0)
        kx, kqkv, kp, kb = jax.random.split(key, 4)
        x = jax.random.normal(kx, (B, N, C), dtype=jnp.float32)
        # Linear-like deterministic init; shapes from __init__:
        #   qkv: Linear(dim, 3*dim, bias=False), proj: Linear(dim, dim, bias=True)
        w_qkv = jax.random.uniform(kqkv, (C, 3 * C), jnp.float32, -1.0, 1.0) * (C ** -0.5)
        w_proj = jax.random.uniform(kp, (C, C), jnp.float32, -1.0, 1.0) * (C ** -0.5)
        b_proj = jax.random.uniform(kb, (C,), jnp.float32, -1.0, 1.0) * (C ** -0.5)

        out = multi_head_self_attention(x, w_qkv, w_proj, b_proj,
                                        num_heads=num_heads, seq_tile=seq_tile)
        out = jax.block_until_ready(out)
        ref = _reference(x, w_qkv, w_proj, b_proj, num_heads=num_heads)
        assert out.shape == (B, N, C)
        # bf16 MXU operands with f32 accumulation -> bf16-level tolerance vs f32 reference.
        assert jnp.allclose(out, ref, atol=3e-2, rtol=3e-2), \
            f"mismatch vs reference at (B={B}, N={N}, C={C}, H={num_heads})"

    # Small case exercising the query-tile grid axis (2 tiles per batch element).
    run_case(2, 16, 32, 4, 8)
    # Slightly larger case: 8 heads, resident K/V reused across 4 query tiles.
    run_case(1, 64, 64, 8, 16)

    print("KERNEL_OK")
</pallas_src>

<mosaic_0001>
module attributes {stable_mosaic.version = 11 : i64} {
  func.func @_qkv_proj_kernel(%arg0: i32, %arg1: i32, %arg2: memref<1x8x32xbf16, #tpu.memory_space<vmem>>, %arg3: memref<32x32xbf16, #tpu.memory_space<vmem>>, %arg4: memref<32x32xbf16, #tpu.memory_space<vmem>>, %arg5: memref<32x32xbf16, #tpu.memory_space<vmem>>, %arg6: memref<1x8x32xbf16, #tpu.memory_space<vmem>>, %arg7: memref<1x8x32xbf16, #tpu.memory_space<vmem>>, %arg8: memref<1x8x32xbf16, #tpu.memory_space<vmem>>) attributes {dimension_semantics = [#tpu.dimension_semantics<parallel>, #tpu.dimension_semantics<parallel>], iteration_bounds = array<i64: 2, 2>, scalar_prefetch = 0 : i64, scratch_operands = 0 : i64, tpu.core_type = #tpu.core_type<tc>, window_params = [{transform_indices = @transform_0, window_bounds = array<i64: 1, 8, 32>}, {pipeline_mode = #tpu.pipeline_mode<synchronous>, transform_indices = @transform_1, window_bounds = array<i64: 32, 32>}, {pipeline_mode = #tpu.pipeline_mode<synchronous>, transform_indices = @transform_2, window_bounds = array<i64: 32, 32>}, {pipeline_mode = #tpu.pipeline_mode<synchronous>, transform_indices = @transform_3, window_bounds = array<i64: 32, 32>}, {transform_indices = @transform_4, window_bounds = array<i64: 1, 8, 32>}, {transform_indices = @transform_5, window_bounds = array<i64: 1, 8, 32>}, {transform_indices = @transform_6, window_bounds = array<i64: 1, 8, 32>}]} {
    %c0 = arith.constant 0 : index
    %c0_0 = arith.constant 0 : index
    %c0_1 = arith.constant 0 : index
    %0 = vector.load %arg2[%c0, %c0_0, %c0_1] : memref<1x8x32xbf16, #tpu.memory_space<vmem>>, vector<1x8x32xbf16>
    %1 = vector.shape_cast %0 : vector<1x8x32xbf16> to vector<8x32xbf16>
    %c0_2 = arith.constant 0 : index
    %c0_3 = arith.constant 0 : index
    %2 = vector.load %arg3[%c0_2, %c0_3] : memref<32x32xbf16, #tpu.memory_space<vmem>>, vector<32x32xbf16>
    %cst = arith.constant dense<0.000000e+00> : vector<8x32xf32>
    %3 = tpu.matmul %1, %2, %cst {dimension_numbers = #tpu.dot_dimension_numbers<[1], [0], [0], [1], [0, 0, 1, 1], [], []>} : vector<8x32xbf16>, vector<32x32xbf16>, vector<8x32xf32> -> vector<8x32xf32>
    %4 = arith.truncf %3 : vector<8x32xf32> to vector<8x32xbf16>
    %c0_4 = arith.constant 0 : index
    %c0_5 = arith.constant 0 : index
    %c0_6 = arith.constant 0 : index
    %5 = vector.load %arg6[%c0_4, %c0_5, %c0_6] : memref<1x8x32xbf16, #tpu.memory_space<vmem>>, vector<1x8x32xbf16>
    %6 = vector.shape_cast %5 : vector<1x8x32xbf16> to vector<8x32xbf16>
    %7 = vector.shape_cast %4 : vector<8x32xbf16> to vector<1x8x32xbf16>
    tpu.vector_store %arg6[%c0_4, %c0_5, %c0_6], %7 {strides = array<i32>} : memref<1x8x32xbf16, #tpu.memory_space<vmem>>, vector<1x8x32xbf16>,
    %c0_7 = arith.constant 0 : index
    %c0_8 = arith.constant 0 : index
    %8 = vector.load %arg4[%c0_7, %c0_8] : memref<32x32xbf16, #tpu.memory_space<vmem>>, vector<32x32xbf16>
    %cst_9 = arith.constant dense<0.000000e+00> : vector<8x32xf32>
    %9 = tpu.matmul %1, %8, %cst_9 {dimension_numbers = #tpu.dot_dimension_numbers<[1], [0], [0], [1], [0, 0, 1, 1], [], []>} : vector<8x32xbf16>, vector<32x32xbf16>, vector<8x32xf32> -> vector<8x32xf32>
    %10 = arith.truncf %9 : vector<8x32xf32> to vector<8x32xbf16>
    %c0_10 = arith.constant 0 : index
    %c0_11 = arith.constant 0 : index
    %c0_12 = arith.constant 0 : index
    %11 = vector.load %arg7[%c0_10, %c0_11, %c0_12] : memref<1x8x32xbf16, #tpu.memory_space<vmem>>, vector<1x8x32xbf16>
    %12 = vector.shape_cast %11 : vector<1x8x32xbf16> to vector<8x32xbf16>
    %13 = vector.shape_cast %10 : vector<8x32xbf16> to vector<1x8x32xbf16>
    tpu.vector_store %arg7[%c0_10, %c0_11, %c0_12], %13 {strides = array<i32>} : memref<1x8x32xbf16, #tpu.memory_space<vmem>>, vector<1x8x32xbf16>,
    %c0_13 = arith.constant 0 : index
    %c0_14 = arith.constant 0 : index
    %14 = vector.load %arg5[%c0_13, %c0_14] : memref<32x32xbf16, #tpu.memory_space<vmem>>, vector<32x32xbf16>
    %cst_15 = arith.constant dense<0.000000e+00> : vector<8x32xf32>
    %15 = tpu.matmul %1, %14, %cst_15 {dimension_numbers = #tpu.dot_dimension_numbers<[1], [0], [0], [1], [0, 0, 1, 1], [], []>} : vector<8x32xbf16>, vector<32x32xbf16>, vector<8x32xf32> -> vector<8x32xf32>
    %16 = arith.truncf %15 : vector<8x32xf32> to vector<8x32xbf16>
    %c0_16 = arith.constant 0 : index
    %c0_17 = arith.constant 0 : index
    %c0_18 = arith.constant 0 : index
    %17 = vector.load %arg8[%c0_16, %c0_17, %c0_18] : memref<1x8x32xbf16, #tpu.memory_space<vmem>>, vector<1x8x32xbf16>
    %18 = vector.shape_cast %17 : vector<1x8x32xbf16> to vector<8x32xbf16>
    %19 = vector.shape_cast %16 : vector<8x32xbf16> to vector<1x8x32xbf16>
    tpu.vector_store %arg8[%c0_16, %c0_17, %c0_18], %19 {strides = array<i32>} : memref<1x8x32xbf16, #tpu.memory_space<vmem>>, vector<1x8x32xbf16>,
    return
  }
  func.func @transform_0(%arg0: i32, %arg1: i32) -> (i32, i32, i32) {
    %c0_i32 = arith.constant 0 : i32
    %c0_i32_0 = arith.constant 0 : i32
    return %arg0, %arg1, %c0_i32 : i32, i32, i32
  }
  func.func @transform_1(%arg0: i32, %arg1: i32) -> (i32, i32) {
    %c0_i32 = arith.constant 0 : i32
    %c0_i32_0 = arith.constant 0 : i32
    %c0_i32_1 = arith.constant 0 : i32
    return %c0_i32, %c0_i32_0 : i32, i32
  }
  func.func @transform_2(%arg0: i32, %arg1: i32) -> (i32, i32) {
    %c0_i32 = arith.constant 0 : i32
    %c0_i32_0 = arith.constant 0 : i32
    %c0_i32_1 = arith.constant 0 : i32
    return %c0_i32, %c0_i32_0 : i32, i32
  }
  func.func @transform_3(%arg0: i32, %arg1: i32) -> (i32, i32) {
    %c0_i32 = arith.constant 0 : i32
    %c0_i32_0 = arith.constant 0 : i32
    %c0_i32_1 = arith.constant 0 : i32
    return %c0_i32, %c0_i32_0 : i32, i32
  }
  func.func @transform_4(%arg0: i32, %arg1: i32) -> (i32, i32, i32) {
    %c0_i32 = arith.constant 0 : i32
    %c0_i32_0 = arith.constant 0 : i32
    return %arg0, %arg1, %c0_i32 : i32, i32, i32
  }
  func.func @transform_5(%arg0: i32, %arg1: i32) -> (i32, i32, i32) {
    %c0_i32 = arith.constant 0 : i32
    %c0_i32_0 = arith.constant 0 : i32
    return %arg0, %arg1, %c0_i32 : i32, i32, i32
  }
  func.func @transform_6(%arg0: i32, %arg1: i32) -> (i32, i32, i32) {
    %c0_i32 = arith.constant 0 : i32
    %c0_i32_0 = arith.constant 0 : i32
    return %arg0, %arg1, %c0_i32 : i32, i32, i32
  }
}

</mosaic_0001>

<bundles_post_ra>
// kernel: tpu_custom_call.1
= control target key start
LH: loop header
LB: loop body
LE: loop exit
PB: predicated region body
PF: predicated region fallthrough
CT: control target
= control target key end

     0   :  { %s1698_s0 = inlined_call_operand.hbm [shape: bf16[2,16,32], index: 0, kind: input, shape index: {}]   ;;  %s1699_s1 = inlined_call_operand.hbm [shape: bf16[32,32], index: 1, kind: input, shape index: {}]   ;;  %s1700_s2 = inlined_call_operand.hbm [shape: bf16[32,32], index: 2, kind: input, shape index: {}]   ;;  %s1701_s3 = inlined_call_operand.hbm [shape: bf16[32,32], index: 3, kind: input, shape index: {}]   ;;  %s1702_s4 = inlined_call_operand.hbm [shape: bf16[2,16,32], index: 4, kind: output, shape index: {0}]   ;;  %s1703_s5 = inlined_call_operand.hbm [shape: bf16[2,16,32], index: 5, kind: output, shape index: {1}]   ;;  %s1704_s6 = inlined_call_operand.hbm [shape: bf16[2,16,32], index: 6, kind: output, shape index: {2}]  }
   0x1   :  { %1713 = sst [smem:[#allocation21_spill]] %s1699_s1 }
   0x2   :  { %1714 = sst [smem:[#allocation22_spill]] %s1700_s2 }
   0x3   :  { %1715 = sst [smem:[#allocation23_spill]] %s1701_s3 }
   0x4   :  { %1716 = sst [smem:[#allocation24_spill]] %s1703_s5 }
   0x5   :  { %1717 = sst [smem:[#allocation25_spill]] %s1704_s6 }
   0x6   :  { %12 = vsyncpa [#allocation3], 0 }
   0x7   :  { %14 = vsyncpa [#allocation3 + $0x1], 0 }
   0x8   :  { %15 = vsyncpa [#allocation6], 0 }
   0x9   :  { %16 = vsyncpa [#allocation9], 0 }
   0xa   :  { %17 = vsyncpa [#allocation4], 0 }
   0xb   :  { %19 = vsyncpa [#allocation4 + $0x1], 0 }
   0xc   :  { %20 = vsyncpa [#allocation12], 0 }
   0xd   :  { %22 = vsyncpa [#allocation12 + $0x1], 0  ;;  %s1295_s21 = smov 0   ;;  %s1297_s22 = smov 0  }
   0xe   :  { %s1299_s23 = smov 0   ;;  %s1301_s24 = smov 0  }
   0xf   :  { %s1303_s25 = smov 0   ;;  %s1305_s26 = smov 0  }
  0x10   :  { %s1307_s27 = smov 0   ;;  %s1309_s28 = smov 0  }
  0x11 LB: > { %1718 = sst [smem:[#allocation19_spill]] %s1219_s21  ;;  %s1336_s29 = sadd.s32 4294967295, %s1247_s28   ;;  %s1247_s28 = sphi %s1309_s28, %s28_s28   ;;  %s1243_s27 = sphi %s1307_s27, %s1750_s27   ;;  %s1239_s26 = sphi %s1305_s26, %s1749_s26   ;;  %s1235_s25 = sphi %s1303_s25, %s1748_s25   ;;  %s1231_s24 = sphi %s1301_s24, %s1747_s24   ;;  %s1227_s23 = sphi %s1299_s23, %s1746_s23   ;;  %s1223_s22 = sphi %s1297_s22, %s1745_s22   ;;  %s1219_s21 = sphi %s1295_s21, %s1744_s21  }
  0x12   : > { %s1705_s30 = sadd.s32 4294967294, %s1247_s28   ;;  %p62_p0 = scmp.ne.s32.totalorder %s1223_s22, %s1219_s21 }
  0x13   : > { %p1706_p1 = scmp.eq.s32.totalorder %s1336_s29, 0  ;;  %p157_p3 = scmp.eq.s32.totalorder %s1705_s30, 3 }
  0x14   : > { %p769_p5 = scmp.ge.s32.totalorder %s1247_s28, 1  ;;  %p220_p7 = scmp.lt.s32.totalorder %s1247_s28, 5 }
  0x15   : > { %p1347_p4 = por %p1706_p1, %p62_p0  ;;  %p1352_p6 = por %p157_p3, %p62_p0 }
  0x16   : > { %p1357_p8 = pnand %p769_p5, %p220_p7  ;;  %s1249_s10 = smov [#allocation5]  }
  0x17   : > { %s1719_s7 = scalar_select %p1347_p4, 1, 0 }
  0x18   : > { %s1720_s8 = scalar_select %p1352_p6, 1, 0 }
  0x19   : > { %s1722_s9 = scalar_select %p1357_p8, 1, 0 }
  0x1a   : > { %1721 = sst [smem:[#allocation20_spill]] %s1720_s8  ;;  %s232_s11 = sshll.u32 %s1249_s10, 4  ;;  %s1361_s11 = int_to_ptr.vmem [resolvable:$true] %s232_s11 }
  0x1b   : > { %p858_p9 = pneg %p1357_p8  ;;  %s1250_s13 = smov [#allocation7]  }
  0x1c   : > { %s245_s14 = sshll.u32 %s1250_s13, 4  ;;  %s1251_s15 = smov [#allocation8]   ;;  %s1371_s14 = int_to_ptr.vmem [resolvable:$true] %s245_s14 }
  0x1d   : > { %p1367_p10 = pnand %p858_p9, %p1706_p1  ;;  %s1373_s16 = sshll.u32 %s1251_s15, 4  ;;  %s259_s16 = int_to_ptr.vmem [resolvable:$true] %s1373_s16 }
  0x1e   : > { %s1724_s1 = sld [smem:[#allocation21_spill]] }
  0x1f   : > { %p1383_p12 = pneg %p1367_p10 }
  0x24   : > { %s967_s19 = scalar_lea.hbm %s1724_s1, 256 }
  0x25   : > { %p968_p11 = scmp.ne.s32.totalorder %s1724_s1, %s967_s19  ;;  %p974_p3 = scmp.lt.u32.totalorder %s967_s19, %s1724_s1 }
  0x27   : > { %p970_p13 = pnand %p1383_p12, %p968_p11 }
  0x29   : > { %p971_p0 = pneg %p970_p13 }
  0x2b   : > { %p976_p5 = pnand %p974_p3, %p971_p0 }
  0x2d   : > { %979 = shalt.err (!%p976_p5)
}
  0x2e   : > { %s980_s17 = scalar_lea.vmem %s1361_s11, 256  ;;  %p988_p2 = scmp.lt.s32.totalorder %s1361_s11, %s1361_s11 }
  0x2f   : > { %p981_p7 = scmp.ne.s32.totalorder %s1361_s11, %s980_s17  ;;  %p989_p6 = scmp.lt.s32.totalorder %s980_s17, %s980_s17 }
  0x31   : > { %p983_p9 = pnand %p981_p7, %p1383_p12  ;;  %p990_p11 = por %p989_p6, %p988_p2 }
  0x33   : > { %p984_p1 = pneg %p983_p9 }
  0x35   : > { %p991_p13 = pnand %p990_p11, %p984_p1 }
  0x37   : > { %994 = shalt.err (!%p991_p13)
}
  0x38   : > { %s1252_s18 = smov 64   ;;  %s1253_s19 = smov 4  }
  0x39   : > { %861 = dma.hbm_to_vmem [thread:$0]  (!%p1367_p10), %s1724_s1, 256, %s1361_s11, [#allocation6], %s1252_s18, %s1252_s18, %s1253_s19  }
  0x3a   : > { %s1726_s2 = sld [smem:[#allocation22_spill]] }
  0x40   : > { %s995_s17 = scalar_lea.hbm %s1726_s2, 256 }
  0x41   : > { %p996_p1 = scmp.ne.s32.totalorder %s1726_s2, %s995_s17  ;;  %p1002_p0 = scmp.lt.u32.totalorder %s995_s17, %s1726_s2 }
  0x43   : > { %p998_p2 = pnand %p996_p1, %p1383_p12 }
  0x45   : > { %p999_p6 = pneg %p998_p2 }
  0x47   : > { %p1004_p3 = pnand %p1002_p0, %p999_p6 }
  0x49   : > { %1007 = shalt.err (!%p1004_p3)
}
  0x4a   : > { %s1008_s11 = scalar_lea.vmem %s1371_s14, 256  ;;  %p1016_p11 = scmp.lt.s32.totalorder %s1371_s14, %s1371_s14 }
  0x4b   : > { %p1009_p5 = scmp.ne.s32.totalorder %s1371_s14, %s1008_s11  ;;  %p1017_p13 = scmp.lt.s32.totalorder %s1008_s11, %s1008_s11 }
  0x4d   : > { %p1011_p7 = pnand %p1009_p5, %p1383_p12  ;;  %p1018_p1 = por %p1017_p13, %p1016_p11 }
  0x4f   : > { %p1012_p9 = pneg %p1011_p7 }
  0x51   : > { %p1019_p2 = pnand %p1018_p1, %p1012_p9 }
  0x53   : > { %1022 = shalt.err (!%p1019_p2)
}
  0x54   : > { %864 = dma.hbm_to_vmem [thread:$0]  (!%p1367_p10), %s1726_s2, 256, %s1371_s14, [#allocation6], %s1252_s18, %s1252_s18, %s1253_s19  }
  0x55   : > { %s1727_s3 = sld [smem:[#allocation23_spill]] }
  0x5b   : > { %s1023_s20 = scalar_lea.hbm %s1727_s3, 256 }
  0x5c   : > { %p1024_p6 = scmp.ne.s32.totalorder %s1727_s3, %s1023_s20  ;;  %p1030_p5 = scmp.lt.u32.totalorder %s1023_s20, %s1727_s3 }
  0x5e   : > { %p1026_p0 = pnand %p1024_p6, %p1383_p12 }
  0x60   : > { %p1027_p3 = pneg %p1026_p0 }
  0x62   : > { %p1032_p7 = pnand %p1030_p5, %p1027_p3 }
  0x64   : > { %1035 = shalt.err (!%p1032_p7)
}
  0x65   : > { %s1036_s11 = scalar_lea.vmem %s259_s16, 256  ;;  %p1044_p1 = scmp.lt.s32.totalorder %s259_s16, %s259_s16 }
  0x66   : > { %p1037_p9 = scmp.ne.s32.totalorder %s259_s16, %s1036_s11  ;;  %p1045_p2 = scmp.lt.s32.totalorder %s1036_s11, %s1036_s11 }
  0x68   : > { %p1039_p11 = pnand %p1037_p9, %p1383_p12  ;;  %p1046_p4 = por %p1045_p2, %p1044_p1 }
  0x6a   : > { %p1040_p13 = pneg %p1039_p11 }
  0x6c   : > { %p1047_p8 = pnand %p1046_p4, %p1040_p13 }
  0x6e   : > { %1050 = shalt.err (!%p1047_p8)
}
  0x6f   : > { %867 = dma.hbm_to_vmem [thread:$0]  (!%p1367_p10), %s1727_s3, 256, %s259_s16, [#allocation9], %s1252_s18, %s1252_s18, %s1253_s19  }
  0x70   : > { %s37_s30 = sadd.s32 1, %s1239_s26  ;;  %s40_s12 = sadd.s32 1, %s1243_s27 }
  0x71   : > { %p38_p4 = scmp.ge.s32.totalorder %s37_s30, 2  ;;  %s49_s6 = sadd.s32 1, %s1227_s23 }
  0x72   : > { %p56_p8 = scmp.ne.s32.totalorder %s1227_s23, %s1223_s22  ;;  %p57_p12 = scmp.eq.s32.totalorder %s1247_s28, 0 }
  0x73   : > { %s1752_s30 = smov (%p38_p4, %s37_s30), 0  ;;  %s1754_s12 = smov (!%p38_p4, %s40_s12), %s1243_s27 }
  0x74   : > { %s45_s21 = ssub.s32 %s1239_s26, %s1752_s30  ;;  %p42_p6 = scmp.ge.s32.totalorder %s1754_s12, 2 }
  0x75   : > { %p1728_p0 = scmp.eq.s32.totalorder %s1336_s29, 3  ;;  %p1472_p10 = por %p57_p12, %p56_p8 }
  0x76   : > { %p885_p5 = scmp.lt.s32.totalorder %s1247_s28, 4  ;;  %s1756_s12 = smov (%p42_p6, %s1754_s12), 0 }
  0x77   : > { %p1468_p3 = por %p1728_p0, %p56_p8  ;;  %s272_s18 = sand.u32 1, %s1227_s23  }
  0x78   : > { %s775_s19 = sshll.u32 %s1243_s27, 1  ;;  %s44_s20 = ssub.s32 %s1243_s27, %s1756_s12 }
  0x79   : > { %s46_s10 = sor.u32 %s45_s21, %s44_s20  ;;  %s774_s13 = sshll.u32 %s272_s18, 2 }
  0x7a   : > { %p47_p7 = scmp.eq.s32.totalorder %s46_s10, 0  ;;  %s281_s15 = sadd.s32 %s1239_s26, %s775_s19 }
  0x7b   : > { %s276_s17 = scalar_lea.vmem [#allocation2], %s774_s13  ;;  %s776_s5 = sshll.u32 %s281_s15, 6 }
  0x7c   : > { %s285_s11 = sshll.u32 %s276_s17, 4  ;;  %s1492_s3 = scalar_lea.hbm %s1698_s0, %s776_s5  ;;  %s1487_s11 = int_to_ptr.vmem [resolvable:$true] %s285_s11 }
  0x7d   : > { %s1485_s14 = scalar_select %p47_p7, %s1227_s23, %s49_s6  }
  0x7e   : > { %p1498_p9 = pnand %p885_p5, %p1472_p10  ;;  %s273_s6 = scalar_lea.sflag [#allocation3], %s272_s18 }
  0x7f   : > { %s1051_s19 = scalar_lea.hbm %s1492_s3, 64  ;;  %s1056_s16 = scalar_lea.hbm %s1698_s0, 256 }
  0x80   : > { %p1052_p11 = scmp.ne.s32.totalorder %s1492_s3, %s1051_s19  ;;  %p1053_p13 = pneg %p1498_p9 }
  0x81   : > { %p1057_p4 = scmp.lt.u32.totalorder %s1492_s3, %s1698_s0  ;;  %p1058_p8 = scmp.lt.u32.totalorder %s1056_s16, %s1051_s19 }
  0x82   : > { %p1054_p1 = pnand %p1053_p13, %p1052_p11  ;;  %p1060_p6 = scmp.lt.u32.totalorder %s1051_s19, %s1492_s3 }
  0x83   : > { %p1059_p12 = por %p1058_p8, %p1057_p4 }
  0x84   : > { %p1055_p2 = pneg %p1054_p1 }
  0x85   : > { %p1061_p0 = por %p1060_p6, %p1059_p12 }
  0x87   : > { %p1062_p10 = pnand %p1061_p0, %p1055_p2 }
  0x89   : > { %1065 = shalt.err (!%p1062_p10)
}
  0x8a   : > { %s1066_s18 = scalar_lea.vmem %s1487_s11, 64  ;;  %s1254_s13 = smov [#allocation2]  }
  0x8b   : > { %p1067_p5 = scmp.ne.s32.totalorder %s1487_s11, %s1066_s18  ;;  %s1071_s15 = sshll.u32 %s1254_s13, 4  ;;  %s1072_s15 = int_to_ptr.vmem [resolvable:$false] %s1071_s15 }
  0x8c   : > { %s1073_s17 = scalar_lea.vmem %s1072_s15, 128  ;;  %p1074_p1 = scmp.lt.s32.totalorder %s1487_s11, %s1072_s15 }
  0x8d   : > { %p1069_p7 = pnand %p1067_p5, %p1053_p13  ;;  %p1075_p4 = scmp.lt.s32.totalorder %s1073_s17, %s1066_s18 }
  0x8f   : > { %p1070_p11 = pneg %p1069_p7  ;;  %p1076_p8 = por %p1075_p4, %p1074_p1 }
  0x91   : > { %p1077_p12 = pnand %p1076_p8, %p1070_p11 }
  0x93   : > { %1080 = shalt.err (!%p1077_p12)
}
  0x94   : > { %871 = dma.hbm_to_vmem [thread:$0]  (!%p1498_p9), %s1492_s3, 64, %s1487_s11, %s273_s6  }
  0x95   : > { %p1732_p2 = scmp.ne.s32.totalorder %s1722_s9, 0 }
  0x96   : > { %s1530_s5 = sand.u32 (!%p1732_p2), 1, %s1223_s22   ;;  %p1733_p13 = scmp.ne.s32.totalorder (!%p1732_p2), %s1719_s7, 0 }
  0x97   : > { %294 = sbr.rel (%p1732_p2) target bundleno = 454 (0x1c6), region = 36  ;;  %s1533_s19 = sshll.u32 (!%p1732_p2), %s1530_s5, 2 }
  0x98   : > { %s297_s1 = scalar_lea.sflag (!%p1732_p2), [#allocation3], %s1530_s5  ;;  %s300_s2 = scalar_lea.vmem (!%p1732_p2), [#allocation2], %s1533_s19 }
  0x9e   : > { %1198 = dma.done.wait (%p1733_p13), %s297_s1, 64  }
  0x9f   : > { %1200 = vsyncadd (%p1733_p13), %s297_s1, 4294967232  ;;  %p1734_p9 = scmp.eq.s32.totalorder %s1336_s29, 0 }
  0xa1   : > { %1202 = dma.done.wait (%p1734_p9), [#allocation6], 512   ;;  %p1735_p6 = pmov %p1734_p9 }
  0xa3   : > { %1204 = vsyncadd (%p1735_p6), [#allocation6], 4294966784  ;;  %p1736_p0 = pmov %p1735_p6 }
  0xa5   : > { %1206 = dma.done.wait (%p1736_p0), [#allocation9], 256   ;;  %p1737_p10 = pmov %p1736_p0 }
  0xa6   : > { %v1255_v0 = vmov 0.0   ;;  %vm1256_vm0 = vmmov 0   ;;  %v961_v1 = vld [vmem:[#allocation5] sm:$0xff]   ;;  %v962_v2 = vld [vmem:[#allocation5 + $0x8] sm:$0xff]   ;;  %v963_v3 = vld [vmem:[#allocation7] sm:$0xff]   ;;  %vm369_vm1 = vcmask 261120  }
  0xa7   : > { %1208 = vsyncadd (%p1737_p10), [#allocation9], 4294967040  ;;  %814 = vmatprep.subr.bf16.mxu0 %v1255_v0  ;;  %822 = vmatprep.subr.bf16.mxu1 %v1255_v0  ;;  %v965_v4 = vld [vmem:[#allocation7 + $0x8] sm:$0xff]   ;;  %v964_v6 = vld [vmem:[#allocation8] sm:$0xff]   ;;  %s797_s3 = sshll.u32 %s1235_s25, 1  ;;  %s336_s11 = scalar_lea.vmem [#allocation10], %s1533_s19 }
  0xa8   : > { %818 = vmatprep.mubr.msk.bf16.mxu0 %vm1256_vm0, %v1255_v0  ;;  %826 = vmatprep.mubr.msk.bf16.mxu1 %vm1256_vm0, %v1255_v0  ;;  %v352_v5 = vld [vmem:[%s300_s2] sm:$0xf]  ;;  %v966_v7 = vld [vmem:[#allocation8 + $0x8] sm:$0xff]   ;;  %s554_s7 = sadd.s32 %s1231_s24, %s797_s3  ;;  %s558_s21 = sshll.u32 %s336_s11, 4  ;;  %vm414_vm2 = vcmask 257024   ;;  %s1567_s21 = int_to_ptr.vmem [resolvable:$true] %s558_s21 }
  0xa9   : > { %815 = vmatpush3.bf16.msra.mxu0 %v961_v1  ;;  %823 = vmatpush3.bf16.msra.mxu1 %v963_v3  ;;  %s1554_s9 = sshll.u32 %s554_s7, 6  ;;  %s537_s6 = sand.u32 1, %s1336_s29  }
  0xaa   : > { %816 = vmatprep.subr.bf16.mxu0 %v1255_v0  ;;  %824 = vmatprep.subr.bf16.mxu1 %v1255_v0  ;;  %s343_s16 = scalar_lea.vmem [#allocation11], %s1533_s19  ;;  %s1565_s24 = scalar_lea.hbm %s1702_s4, %s1554_s9 }
  0xab   : > { %s573_s20 = sshll.u32 %s343_s16, 4  ;;  %s1738_s15 = sld [smem:[#allocation24_spill]]  ;;  %s1575_s20 = int_to_ptr.vmem [resolvable:$true] %s573_s20 }
  0xac   : > { %s533_s1 = scalar_lea.sflag [#allocation4], %s1530_s5  ;;  %s1081_s2 = scalar_lea.vmem %s1567_s21, 64 }
  0xad   : > { %817 = vmatpush3.bf16.msra.mxu0 %v962_v2  ;;  %825 = vmatpush3.bf16.msra.mxu1 %v965_v4  ;;  %p1082_p5 = scmp.ne.s32.totalorder %s1567_s21, %s1081_s2  ;;  %s1257_s3 = smov [#allocation10]  }
  0xae   : > { %830 = vmatprep.subr.bf16.mxu0 %v1255_v0  ;;  %s1085_s7 = sshll.u32 %s1257_s3, 4  ;;  %s1086_s7 = int_to_ptr.vmem [resolvable:$false] %s1085_s7 }
  0xaf   : > { %p1083_p7 = pnand %p1082_p5, %p1468_p3  ;;  %s1087_s10 = scalar_lea.vmem %s1086_s7, 128 }
  0xb0   : > { %819 = vmatmul.mubr.msk.bf16.vlgmr.msra.gmra.mrb[0].mxu0 %vm369_vm1, %v352_v5  ;;  %827 = vmatmul.mubr.msk.bf16.vlgmr.msra.gmra.mrb[0].mxu1 %vm369_vm1, %v352_v5  ;;  %p1088_p1 = scmp.lt.s32.totalorder %s1567_s21, %s1086_s7  ;;  %p1089_p4 = scmp.lt.s32.totalorder %s1087_s10, %s1081_s2 }
  0xb1   : > { %831 = vmatpush3.bf16.msra.mxu0 %v964_v6  ;;  %834 = vmatprep.mubr.msk.bf16.mxu0 %vm1256_vm0, %v1255_v0  ;;  %s1573_s17 = scalar_lea.hbm %s1738_s15, %s1554_s9  ;;  %p1084_p11 = pneg %p1083_p7 }
  0xb2   : > { %832 = vmatprep.subr.bf16.mxu0 %v1255_v0  ;;  %p1090_p8 = por %p1089_p4, %p1088_p1 }
  0xb4   : > { %p1091_p12 = pnand %p1090_p8, %p1084_p11 }
  0xb5   : > { %833 = vmatpush3.bf16.msra.mxu0 %v966_v7 }
  0xb8   : > { %835 = vmatmul.mubr.msk.bf16.vlgmr.msra.gmra.mrb[4].mxu0 %vm369_vm1, %v352_v5 }
 0x183   : > { %v407_v8 = vpop.f32.mrb[0].mxu0  ;;  %v466_v12 = vpop.f32.mrb[0].mxu1 }
 0x184   : > { %v413_v9 = vpack.c.bf16 %v407_v8, %v407_v8  ;;  %v820_v10 = vpop.f32.mrb[1].mxu0  ;;  %v472_v14 = vpack.c.bf16 %v466_v12, %v466_v12  ;;  %v828_v15 = vpop.f32.mrb[1].mxu1 }
 0x185   : > { %v410_v11 = vpop.f32.mrb[2].mxu0  ;;  %v469_v16 = vpop.f32.mrb[2].mxu1 }
 0x186   : > { %v821_v13 = vpop.f32.mrb[3].mxu0  ;;  %415 = vst.msk [vmem:[%s336_s11] sm:$0xf] %vm414_vm2, %v413_v9 }
 0x187   : > { %1094 = shalt.err (!%p1091_p12)
}
 0x188   : > { %s1095_s5 = scalar_lea.hbm %s1565_s24, 64  ;;  %s1099_s25 = scalar_lea.hbm %s1702_s4, 256 }
 0x189   : > { %p1096_p2 = scmp.ne.s32.totalorder %s1565_s24, %s1095_s5  ;;  %p1100_p6 = scmp.lt.u32.totalorder %s1565_s24, %s1702_s4 }
 0x18a   : > { %p1101_p0 = scmp.lt.u32.totalorder %s1099_s25, %s1095_s5  ;;  %p1103_p5 = scmp.lt.u32.totalorder %s1095_s5, %s1565_s24 }
 0x18b   : > { %p1097_p13 = pnand %p1096_p2, %p1468_p3 }
 0x18c   : > { %p1102_p10 = por %p1101_p0, %p1100_p6 }
 0x18d   : > { %p1098_p9 = pneg %p1097_p13 }
 0x18e   : > { %p1104_p7 = por %p1103_p5, %p1102_p10 }
 0x190   : > { %p1105_p11 = pnand %p1104_p7, %p1098_p9 }
 0x192   : > { %1108 = shalt.err (!%p1105_p11)
}
 0x193   : > { %852 = dma.vmem_to_hbm [thread:$0]  (%p1468_p3), %s1567_s21, 64, %s1565_s24, %s533_s1   ;;  %v829_v17 = vpop.f32.mrb[3].mxu1  ;;  %473 = vst.msk [vmem:[%s343_s16] sm:$0xf] %vm414_vm2, %v472_v14 }
 0x194   : > { %s350_s2 = scalar_lea.vmem [#allocation13], %s1533_s19  ;;  %s1610_s10 = scalar_lea.sflag [#allocation12], %s537_s6 }
 0x195   : > { %s1606_s7 = sshll.u32 %s350_s2, 4  ;;  %s1109_s5 = scalar_lea.vmem %s1575_s20, 64  ;;  %s1641_s7 = int_to_ptr.vmem [resolvable:$true] %s1606_s7 }
 0x196   : > { %p1110_p1 = scmp.ne.s32.totalorder %s1575_s20, %s1109_s5  ;;  %s1258_s11 = smov [#allocation11]  }
 0x197   : > { %s1113_s18 = sshll.u32 %s1258_s11, 4  ;;  %s1114_s18 = int_to_ptr.vmem [resolvable:$false] %s1113_s18 }
 0x198   : > { %p1111_p4 = pnand %p1110_p1, %p1468_p3  ;;  %s1115_s21 = scalar_lea.vmem %s1114_s18, 128 }
 0x199   : > { %p1116_p12 = scmp.lt.s32.totalorder %s1575_s20, %s1114_s18  ;;  %p1117_p2 = scmp.lt.s32.totalorder %s1115_s21, %s1109_s5 }
 0x19a   : > { %p1112_p8 = pneg %p1111_p4 }
 0x19b   : > { %p1118_p13 = por %p1117_p2, %p1116_p12 }
 0x19d   : > { %p1119_p9 = pnand %p1118_p13, %p1112_p8 }
 0x19f   : > { %1122 = shalt.err (!%p1119_p9)
}
 0x1a0   : > { %s1123_s29 = scalar_lea.hbm %s1573_s17, 64  ;;  %s1127_s24 = scalar_lea.hbm %s1738_s15, 256 }
 0x1a1   : > { %p1124_p6 = scmp.ne.s32.totalorder %s1573_s17, %s1123_s29  ;;  %p1128_p5 = scmp.lt.u32.totalorder %s1573_s17, %s1738_s15 }
 0x1a2   : > { %p1129_p7 = scmp.lt.u32.totalorder %s1127_s24, %s1123_s29  ;;  %p1131_p1 = scmp.lt.u32.totalorder %s1123_s29, %s1573_s17 }
 0x1a3   : > { %p1125_p0 = pnand %p1124_p6, %p1468_p3 }
 0x1a4   : > { %p1130_p11 = por %p1129_p7, %p1128_p5 }
 0x1a5   : > { %p1126_p10 = pneg %p1125_p0 }
 0x1a6   : > { %p1132_p4 = por %p1131_p1, %p1130_p11 }
 0x1a8   : > { %p1133_p8 = pnand %p1132_p4, %p1126_p10 }
 0x1aa   : > { %1136 = shalt.err (!%p1133_p8)
}
 0x1ab   : > { %853 = dma.vmem_to_hbm [thread:$0]  (%p1468_p3), %s1575_s20, 64, %s1573_s17, %s1610_s10   ;;  %v524_v18 = vpop.f32.mrb[4].mxu0 }
 0x1ac   : > { %v530_v19 = vpack.c.bf16 %v524_v18, %v524_v18  ;;  %v836_v20 = vpop.f32.mrb[5].mxu0  ;;  %s1739_s5 = sld [smem:[#allocation25_spill]]  ;;  %s1137_s18 = scalar_lea.vmem %s1641_s7, 64 }
 0x1ad   : > { %v527_v21 = vpop.f32.mrb[6].mxu0  ;;  %p1138_p12 = scmp.ne.s32.totalorder %s1641_s7, %s1137_s18  ;;  %s1259_s20 = smov [#allocation13]  }
 0x1ae   : > { %v837_v22 = vpop.f32.mrb[7].mxu0  ;;  %531 = vst.msk [vmem:[%s350_s2] sm:$0xf] %vm414_vm2, %v530_v19  ;;  %s1141_s17 = sshll.u32 %s1259_s20, 4  ;;  %s1142_s17 = int_to_ptr.vmem [resolvable:$false] %s1141_s17 }
 0x1af   : > { %p1139_p2 = pnand %p1138_p12, %p1468_p3  ;;  %p1144_p9 = scmp.lt.s32.totalorder %s1641_s7, %s1142_s17 }
 0x1b1   : > { %p1140_p13 = pneg %p1139_p2 }
 0x1b2   : > { %s1638_s11 = scalar_lea.hbm %s1739_s5, %s1554_s9  ;;  %s1143_s9 = scalar_lea.vmem %s1142_s17, 128 }
 0x1b3   : > { %p1145_p6 = scmp.lt.s32.totalorder %s1143_s9, %s1137_s18 }
 0x1b5   : > { %p1146_p0 = por %p1145_p6, %p1144_p9 }
 0x1b7   : > { %p1147_p10 = pnand %p1146_p0, %p1140_p13 }
 0x1b9   : > { %1150 = shalt.err (!%p1147_p10)
}
 0x1ba   : > { %s1151_s19 = scalar_lea.hbm %s1638_s11, 64  ;;  %s1155_s29 = scalar_lea.hbm %s1739_s5, 256 }
 0x1bb   : > { %p1152_p5 = scmp.ne.s32.totalorder %s1638_s11, %s1151_s19  ;;  %p1156_p1 = scmp.lt.u32.totalorder %s1638_s11, %s1739_s5 }
 0x1bc   : > { %p1157_p4 = scmp.lt.u32.totalorder %s1155_s29, %s1151_s19  ;;  %p1159_p12 = scmp.lt.u32.totalorder %s1151_s19, %s1638_s11 }
 0x1bd   : > { %p1153_p7 = pnand %p1152_p5, %p1468_p3 }
 0x1be   : > { %p1158_p8 = por %p1157_p4, %p1156_p1 }
 0x1bf   : > { %p1154_p11 = pneg %p1153_p7 }
 0x1c0   : > { %p1160_p2 = por %p1159_p12, %p1158_p8 }
 0x1c2   : > { %p1161_p13 = pnand %p1160_p2, %p1154_p11 }
 0x1c4   : > { %1164 = shalt.err (!%p1161_p13)
}
 0x1c5   : > { %854 = dma.vmem_to_hbm [thread:$0]  (%p1468_p3), %s1641_s7, 64, %s1638_s11, %s1610_s10  }
 0x1c6 PF: > { %s1740_s24 = sld [smem:[#allocation19_spill]]  ;;  %s1741_s1 = sld [smem:[#allocation20_spill]] }
 0x1c7   : > { %p889_p9 = scmp.ge.s32.totalorder %s1247_s28, 2 }
 0x1cc   : > { %s600_s25 = sand.u32 1, %s1740_s24   ;;  %p1742_p6 = scmp.ne.s32.totalorder %s1741_s1, 0 }
 0x1cd   : > { %s601_s13 = scalar_lea.sflag [#allocation4], %s600_s25 }
 0x1ce   : > { %p873_p0 = pnand %p889_p9, %p1742_p6 }
 0x1d0   : > { %1210 = dma.done.wait (!%p873_p0), %s601_s13, 64  }
 0x1d1   : > { %1212 = vsyncadd (!%p873_p0), %s601_s13, 4294967232  ;;  %s1743_s3 = sadd.s32 4294967294, %s1247_s28  }
 0x1d2   : > { %s609_s18 = sand.u32 1, %s1743_s3  }
 0x1d3   : > { %s610_s20 = scalar_lea.sflag [#allocation12], %s609_s18 }
 0x1d4   : > { %1214 = dma.done.wait (!%p873_p0), %s610_s20, 128  }
 0x1d5   : > { %1216 = vsyncadd (!%p873_p0), %s610_s20, 4294967168  ;;  %s28_s28 = sadd.s32 1, %s1247_s28   ;;  %s1744_s21 = smov %s1223_s22 }
 0x1d6   : > { %p25_p3 = scmp.ge.s32.totalorder %s28_s28, 6   ;;  %s1745_s22 = smov %s1227_s23 }
 0x1d7   : > { %s1746_s23 = smov %s1485_s14  ;;  %s1747_s24 = smov %s1239_s26 }
 0x1d8   : > { %s1748_s25 = smov %s1243_s27  ;;  %s1749_s26 = smov %s1752_s30 }
 0x1d9   : > { %s1750_s27 = smov %s1756_s12  ;;  %27 = sbr.rel (!%p25_p3) target bundleno = 17 (0x11), region = 125 }
 0x1e0   :  { %624 = vsyncpa [#allocation3], 1 }
 0x1e1   :  { %626 = vsyncpa [#allocation3 + $0x1], 1 }
 0x1e2   :  { %627 = vsyncpa [#allocation6], 1 }
 0x1e3   :  { %628 = vsyncpa [#allocation9], 1 }
 0x1e4   :  { %629 = vsyncpa [#allocation4], 1 }
 0x1e5   :  { %631 = vsyncpa [#allocation4 + $0x1], 1 }
 0x1e6   :  { %632 = vsyncpa [#allocation12], 1 }
 0x1e7   :  { %634 = vsyncpa [#allocation12 + $0x1], 1 }

</bundles_post_ra>
